<compile_context>
chip_gen: v6e
topology: v6e:2x2x1
jax: 0.10.0
libtpu: 0.0.40
codegen_flags: <defaults>
</compile_context>

<pallas_src>
import jax
import jax.numpy as jnp
import numpy as np
from jax.experimental import pallas as pl
from jax.experimental.pallas import tpu as pltpu

# Fixed Gaussian kernel from the PyTorch module's __init__ (deterministic).
_GAUSS_KERNEL = np.array(
    [
        [0.03797616, 0.044863533, 0.03797616],
        [0.044863533, 0.053, 0.044863533],
        [0.03797616, 0.044863533, 0.03797616],
    ],
    dtype=np.float32,
)
# Separable (rank-1) factorization K ~= outer(v, v) with v = [A, B, A].
# (Exact to ~7e-8 relative; well inside the 1e-5 comparison tolerance.)
_B_TAP = float(np.sqrt(float(_GAUSS_KERNEL[1, 1])))
_A_TAP = float(float(_GAUSS_KERNEL[0, 1]) / _B_TAP)


def _blur_kernel(x_ref, o_ref, xp_ref):
    # x_ref : (1, 3, H, W)    unpadded input planes (channels 0..2 of one image)
    # o_ref : (1, 3, Ho, Wo)  output planes, Ho = H + 2, Wo = W + 2
    # xp_ref: (3, Hp, Wp)     VMEM scratch, Hp = H + 4, Wp = W + 4
    h, w = x_ref.shape[2], x_ref.shape[3]
    ho, wo = o_ref.shape[2], o_ref.shape[3]

    # Fused zero padding: zero the scratch, then store the interior.
    xp_ref[...] = jnp.zeros_like(xp_ref)
    xp_ref[:, 2:2 + h, 2:2 + w] = x_ref[0].astype(jnp.float32)

    a = _A_TAP
    b = _B_TAP
    # Vertical 3-tap pass (sublane-offset slices): (3, Ho, Wp)
    tmp = (a * (xp_ref[:, 0:ho, :] + xp_ref[:, 2:ho + 2, :])
           + b * xp_ref[:, 1:ho + 1, :])
    # Horizontal 3-tap pass (lane-offset slices): (3, Ho, Wo)
    out = (a * (tmp[:, :, 0:wo] + tmp[:, :, 2:wo + 2])
           + b * tmp[:, :, 1:wo + 1])
    o_ref[0] = out.astype(o_ref.dtype)


def gaussian_blur(x: jax.Array) -> jax.Array:
    """x: (N, C>=3, H, W) NCHW. Returns (N, 3, H+2, W+2) float32,
    matching torch F.conv2d(x[:, c:c+1], K3x3, padding=2) concatenated."""
    n, c, h, w = x.shape
    assert c >= 3, "GaussianBlur uses channels 0, 1, 2"
    ho, wo = h + 2, w + 2
    hp, wp = h + 4, w + 4

    out = pl.pallas_call(
        _blur_kernel,
        out_shape=jax.ShapeDtypeStruct((n, 3, ho, wo), jnp.float32),
        grid_spec=pltpu.PrefetchScalarGridSpec(
            num_scalar_prefetch=0,
            grid=(n,),
            in_specs=[
                # Channels 0..2 read directly from the original array
                # (block index 0 on the channel axis -> elements 0..2).
                pl.BlockSpec((1, 3, h, w), lambda i: (i, 0, 0, 0)),
            ],
            out_specs=pl.BlockSpec((1, 3, ho, wo), lambda i: (i, 0, 0, 0)),
            scratch_shapes=[pltpu.VMEM((3, hp, wp), jnp.float32)],
        ),
        compiler_params=pltpu.CompilerParams(
            dimension_semantics=("parallel",)
        ),
    )(x)
    return out


def _reference(x: jax.Array) -> jax.Array:
    """Plain-JAX reference of the PyTorch forward (exact 9-tap conv)."""
    n, _, h, w = x.shape
    pad = 2
    xp = jnp.pad(x[:, :3].astype(jnp.float32),
                 ((0, 0), (0, 0), (pad, pad), (pad, pad)))
    ho, wo = h + 2, w + 2
    wgt = jnp.asarray(_GAUSS_KERNEL)
    acc = jnp.zeros((n, 3, ho, wo), jnp.float32)
    for di in range(3):
        for dj in range(3):
            acc = acc + wgt[di, dj] * xp[:, :, di:di + ho, dj:dj + wo]
    return acc


if __name__ == "__main__":
    key = jax.random.PRNGKey(0)
    x = jax.random.normal(key, (2, 4, 16, 16), dtype=jnp.float32)

    out = gaussian_blur(x)
    out = jax.block_until_ready(out)

    ref = _reference(x)
    assert out.shape == (2, 3, 18, 18), out.shape
    np.testing.assert_allclose(np.asarray(out), np.asarray(ref),
                               rtol=1e-5, atol=1e-5)

    print("KERNEL_OK")
</pallas_src>

<mosaic_0001>
module attributes {stable_mosaic.version = 11 : i64} {
  func.func @_blur_kernel(%arg0: i32, %arg1: memref<1x3x16x16xf32, #tpu.memory_space<vmem>>, %arg2: memref<1x3x18x18xf32, #tpu.memory_space<vmem>>, %arg3: memref<3x20x20xf32, #tpu.memory_space<vmem>>) attributes {dimension_semantics = [#tpu.dimension_semantics<parallel>], iteration_bounds = array<i64: 2>, scalar_prefetch = 0 : i64, scratch_operands = 1 : i64, tpu.core_type = #tpu.core_type<tc>, window_params = [{transform_indices = @transform_0, window_bounds = array<i64: 1, 3, 16, 16>}, {transform_indices = @transform_1, window_bounds = array<i64: 1, 3, 18, 18>}]} {
    %cst = arith.constant 0.000000e+00 : f32
    %0 = vector.broadcast %cst : f32 to vector<3x20x20xf32>
    %c0 = arith.constant 0 : index
    %c0_0 = arith.constant 0 : index
    %c0_1 = arith.constant 0 : index
    %1 = vector.load %arg3[%c0, %c0_0, %c0_1] : memref<3x20x20xf32, #tpu.memory_space<vmem>>, vector<3x20x20xf32>
    tpu.vector_store %arg3[%c0, %c0_0, %c0_1], %0 {strides = array<i32>} : memref<3x20x20xf32, #tpu.memory_space<vmem>>, vector<3x20x20xf32>,
    %c0_2 = arith.constant 0 : index
    %c0_3 = arith.constant 0 : index
    %c0_4 = arith.constant 0 : index
    %c0_5 = arith.constant 0 : index
    %2 = vector.load %arg1[%c0_2, %c0_3, %c0_4, %c0_5] : memref<1x3x16x16xf32, #tpu.memory_space<vmem>>, vector<1x3x16x16xf32>
    %3 = vector.shape_cast %2 : vector<1x3x16x16xf32> to vector<3x16x16xf32>
    %c0_6 = arith.constant 0 : index
    %c2 = arith.constant 2 : index
    %c2_7 = arith.constant 2 : index
    %4 = vector.load %arg3[%c0_6, %c2, %c2_7] : memref<3x20x20xf32, #tpu.memory_space<vmem>>, vector<3x16x16xf32>
    tpu.vector_store %arg3[%c0_6, %c2, %c2_7], %3 {strides = array<i32>} : memref<3x20x20xf32, #tpu.memory_space<vmem>>, vector<3x16x16xf32>,
    %c0_8 = arith.constant 0 : index
    %c0_9 = arith.constant 0 : index
    %c0_10 = arith.constant 0 : index
    %5 = vector.load %arg3[%c0_8, %c0_9, %c0_10] : memref<3x20x20xf32, #tpu.memory_space<vmem>>, vector<3x18x20xf32>
    %c0_11 = arith.constant 0 : index
    %c2_12 = arith.constant 2 : index
    %c0_13 = arith.constant 0 : index
    %6 = vector.load %arg3[%c0_11, %c2_12, %c0_13] : memref<3x20x20xf32, #tpu.memory_space<vmem>>, vector<3x18x20xf32>
    %7 = arith.addf %5, %6 : vector<3x18x20xf32>
    %cst_14 = arith.constant 0.194874734 : f32
    %8 = vector.broadcast %cst_14 : f32 to vector<3x18x20xf32>
    %9 = arith.mulf %8, %7 : vector<3x18x20xf32>
    %c0_15 = arith.constant 0 : index
    %c1 = arith.constant 1 : index
    %c0_16 = arith.constant 0 : index
    %10 = vector.load %arg3[%c0_15, %c1, %c0_16] : memref<3x20x20xf32, #tpu.memory_space<vmem>>, vector<3x18x20xf32>
    %cst_17 = arith.constant 0.230217293 : f32
    %11 = vector.broadcast %cst_17 : f32 to vector<3x18x20xf32>
    %12 = arith.mulf %11, %10 : vector<3x18x20xf32>
    %13 = arith.addf %9, %12 : vector<3x18x20xf32>
    %14 = vector.extract_strided_slice %13 {offsets = [0, 0, 0], sizes = [3, 18, 18], strides = [1, 1, 1]} : vector<3x18x20xf32> to vector<3x18x18xf32>
    %15 = vector.extract_strided_slice %13 {offsets = [0, 0, 2], sizes = [3, 18, 18], strides = [1, 1, 1]} : vector<3x18x20xf32> to vector<3x18x18xf32>
    %16 = arith.addf %14, %15 : vector<3x18x18xf32>
    %cst_18 = arith.constant 0.194874734 : f32
    %17 = vector.broadcast %cst_18 : f32 to vector<3x18x18xf32>
    %18 = arith.mulf %17, %16 : vector<3x18x18xf32>
    %19 = vector.extract_strided_slice %13 {offsets = [0, 0, 1], sizes = [3, 18, 18], strides = [1, 1, 1]} : vector<3x18x20xf32> to vector<3x18x18xf32>
    %cst_19 = arith.constant 0.230217293 : f32
    %20 = vector.broadcast %cst_19 : f32 to vector<3x18x18xf32>
    %21 = arith.mulf %20, %19 : vector<3x18x18xf32>
    %22 = arith.addf %18, %21 : vector<3x18x18xf32>
    %c0_20 = arith.constant 0 : index
    %c0_21 = arith.constant 0 : index
    %c0_22 = arith.constant 0 : index
    %c0_23 = arith.constant 0 : index
    %23 = vector.load %arg2[%c0_20, %c0_21, %c0_22, %c0_23] : memref<1x3x18x18xf32, #tpu.memory_space<vmem>>, vector<1x3x18x18xf32>
    %24 = vector.shape_cast %23 : vector<1x3x18x18xf32> to vector<3x18x18xf32>
    %25 = vector.shape_cast %22 : vector<3x18x18xf32> to vector<1x3x18x18xf32>
    tpu.vector_store %arg2[%c0_20, %c0_21, %c0_22, %c0_23], %25 {strides = array<i32>} : memref<1x3x18x18xf32, #tpu.memory_space<vmem>>, vector<1x3x18x18xf32>,
    return
  }
  func.func @transform_0(%arg0: i32) -> (i32, i32, i32, i32) {
    %c0_i32 = arith.constant 0 : i32
    %c0_i32_0 = arith.constant 0 : i32
    %c0_i32_1 = arith.constant 0 : i32
    %c0_i32_2 = arith.constant 0 : i32
    return %arg0, %c0_i32, %c0_i32_0, %c0_i32_1 : i32, i32, i32, i32
  }
  func.func @transform_1(%arg0: i32) -> (i32, i32, i32, i32) {
    %c0_i32 = arith.constant 0 : i32
    %c0_i32_0 = arith.constant 0 : i32
    %c0_i32_1 = arith.constant 0 : i32
    %c0_i32_2 = arith.constant 0 : i32
    return %arg0, %c0_i32, %c0_i32_0, %c0_i32_1 : i32, i32, i32, i32
  }
}

</mosaic_0001>

<bundles_post_ra>
// kernel: tpu_custom_call.1
= control target key start
LH: loop header
LB: loop body
LE: loop exit
PB: predicated region body
PF: predicated region fallthrough
CT: control target
= control target key end

     0   :  { %6 = vsyncpa [#allocation4], 0  ;;  %s728_s0 = inlined_call_operand.hbm [shape: f32[2,4,16,16], index: 0, kind: input, shape index: {}]   ;;  %s729_s1 = inlined_call_operand.vmem [shape: f32[2,3,18,18], index: 1, kind: output, shape index: {}]  }
   0x1   :  { %8 = vsyncpa [#allocation4 + $0x1], 0  ;;  %s573_s6 = smov 0   ;;  %s575_s7 = smov 0  }
   0x2   :  { %s577_s8 = smov 0   ;;  %s579_s9 = smov 0  }
   0x3 LB: > { %s592_s10 = sadd.s32 4294967295, %s554_s9   ;;  %s595_s11 = sadd.s32 1, %s554_s9   ;;  %s554_s9 = sphi %s579_s9, %s738_s9   ;;  %s550_s8 = sphi %s577_s8, %s737_s8   ;;  %s546_s7 = sphi %s575_s7, %s736_s7   ;;  %s542_s6 = sphi %s573_s6, %s735_s6  }
   0x4   : > { %s18_s12 = ssub.s32 %s554_s9, %s595_s11  ;;  %s21_s13 = sadd.s32 1, %s550_s8 }
   0x5   : > { %p19_p0 = scmp.eq.s32.totalorder %s18_s12, 0  ;;  %p28_p1 = scmp.ne.s32.totalorder %s550_s8, %s546_s7 }
   0x6   : > { %p29_p2 = scmp.eq.s32.totalorder %s554_s9, 0  ;;  %p34_p3 = scmp.ne.s32.totalorder %s546_s7, %s542_s6 }
   0x7   : > { %s605_s14 = scalar_select %p19_p0, %s550_s8, %s21_s13  }
   0x8   : > { %p30_p4 = por %p29_p2, %p28_p1  ;;  %p35_p5 = scmp.eq.s32.totalorder %s592_s10, 0 }
   0x9   : > { %p453_p6 = scmp.lt.s32.totalorder %s554_s9, 2  ;;  %s84_s16 = sand.u32 1, %s550_s8  }
   0xa   : > { %p609_p7 = por %p35_p5, %p34_p3  ;;  %s444_s17 = smul.u32 48, %s84_s16 }
   0xb   : > { %s443_s18 = sshll.u32 %s554_s9, 10  ;;  %p615_p8 = pnand %p453_p6, %p30_p4 }
   0xc   : > { %s731_s15 = scalar_select %p609_p7, 1, 0 }
   0xd   : > { %s622_s22 = scalar_lea.hbm %s728_s0, %s443_s18  ;;  %s88_s23 = scalar_lea.vmem [#allocation3], %s444_s17 }
   0xe   : > { %s95_s24 = sshll.u32 %s88_s23, 4  ;;  %s627_s25 = scalar_lea.sflag [#allocation4], %s84_s16  ;;  %s624_s24 = int_to_ptr.vmem [resolvable:$true] %s95_s24 }
   0xf   : > { %s492_s26 = scalar_lea.hbm %s622_s22, 768  ;;  %p494_p11 = pneg %p615_p8 }
  0x10   : > { %p493_p10 = scmp.ne.s32.totalorder %s622_s22, %s492_s26  ;;  %s497_s29 = scalar_lea.hbm %s728_s0, 2048 }
  0x11   : > { %p498_p0 = scmp.lt.s32.totalorder %s622_s22, %s728_s0  ;;  %p499_p1 = scmp.lt.s32.totalorder %s497_s29, %s492_s26 }
  0x12   : > { %p495_p12 = pnand %p494_p11, %p493_p10 }
  0x13   : > { %p500_p2 = por %p499_p1, %p498_p0 }
  0x14   : > { %p496_p13 = pneg %p495_p12 }
  0x16   : > { %p501_p3 = pnand %p500_p2, %p496_p13 }
  0x18   : > { %504 = shalt.err (!%p501_p3)
}
  0x19   : > { %s505_s3 = scalar_lea.vmem %s624_s24, 768  ;;  %s556_s4 = smov [#allocation3]  }
  0x1a   : > { %p506_p4 = scmp.ne.s32.totalorder %s624_s24, %s505_s3  ;;  %s510_s5 = sshll.u32 %s556_s4, 4  ;;  %s511_s5 = int_to_ptr.vmem [resolvable:$false] %s510_s5 }
  0x1b   : > { %s512_s6 = scalar_lea.vmem %s511_s5, 1536  ;;  %p513_p10 = scmp.lt.s32.totalorder %s624_s24, %s511_s5 }
  0x1c   : > { %p508_p5 = pnand %p506_p4, %p494_p11  ;;  %p514_p12 = scmp.lt.s32.totalorder %s512_s6, %s505_s3 }
  0x1e   : > { %p509_p6 = pneg %p508_p5  ;;  %p515_p9 = por %p514_p12, %p513_p10 }
  0x20   : > { %p516_p7 = pnand %p515_p9, %p509_p6 }
  0x22   : > { %519 = shalt.err (!%p516_p7)
}
  0x23   : > { %s557_s12 = smov 128   ;;  %s558_s13 = smov 8  }
  0x24   : > { %452 = dma.hbm_to_vmem [thread:$0]  (!%p615_p8), %s622_s22, 768, %s624_s24, %s627_s25, %s557_s12, %s557_s12, %s558_s13  }
  0x25   : > { %p103_p11 = scmp.lt.s32.totalorder %s554_s9, 3  ;;  %p733_p13 = scmp.ge.s32.totalorder %s554_s9, 1 }
  0x27   : > { %p104_p0 = pnand %p733_p13, %p103_p11 }
  0x28   : > { %s109_s16 = sand.u32 (!%p104_p0), 1, %s546_s7   ;;  %p734_p7 = scmp.ne.s32.totalorder (!%p104_p0), %s731_s15, 0 }
  0x29   : > { %107 = sbr.rel (%p104_p0) target bundleno = 333 (0x14d), region = 24  ;;  %s110_s18 = scalar_lea.sflag (!%p104_p0), [#allocation4], %s109_s16 }
  0x2a   : > { %s445_s17 = smul.u32 (!%p104_p0), 48, %s109_s16 }
  0x2c   : > { %s113_s20 = scalar_lea.vmem (!%p104_p0), [#allocation3], %s445_s17 }
  0x2e   : > { %537 = dma.done.wait (%p734_p7), %s110_s18, 768  }
  0x2f   : > { %539 = vsyncadd (%p734_p7), %s110_s18, 4294966528  ;;  %vm137_vm0 = vcmask 162816   ;;  %vm140_vm1 = vcmask 158720   ;;  %v559_v0 = vmov 0.0   ;;  %v148_v1 = vld [vmem:[%s113_s20] sm:$0xff]  ;;  %v150_v2 = vld [vmem:[%s113_s20 + $0x10] sm:$0xff] }
  0x30   : > { %138 = vst.msk [vmem:[#allocation2] sm:$0xff] %vm137_vm0, %v559_v0  ;;  %139 = vst.msk [vmem:[#allocation2 + $0x8] sm:$0xff] %vm137_vm0, %v559_v0  ;;  %s560_s9 = smov 2   ;;  %v149_v3 = vld [vmem:[%s113_s20 + $0x8] sm:$0xff]  ;;  %v151_v4 = vld [vmem:[%s113_s20 + $0x18] sm:$0xff]  ;;  %vm178_vm2 = vcmask 146448  }
  0x31   : > { %142 = vst.msk [vmem:[#allocation2 + $0x18] sm:$0xff] %vm137_vm0, %v559_v0  ;;  %143 = vst.msk [vmem:[#allocation2 + $0x20] sm:$0xff] %vm137_vm0, %v559_v0  ;;  %160 = vrot.lane.b32.xlu0 %v148_v1, %s560_s9  ;;  %164 = vrot.lane.b32.xlu1 %v150_v2, %s560_s9  ;;  %v152_v5 = vld [vmem:[%s113_s20 + $0x20] sm:$0xff]  ;;  %v153_v6 = vld [vmem:[%s113_s20 + $0x28] sm:$0xff]  ;;  %s561_s15 = smov 126   ;;  %s562_s19 = smov 127  }
  0x32   : > { %145 = vst.msk [vmem:[#allocation2 + $0x30] sm:$0xff] %vm137_vm0, %v559_v0  ;;  %146 = vst.msk [vmem:[#allocation2 + $0x38] sm:$0xff] %vm137_vm0, %v559_v0  ;;  %p132_p8 = scmp.lt.s32.totalorder %s592_s10, 1  ;;  %vm356_vm3 = vcmask 146432   ;;  %vm359_vm4 = vcmask 140288  }
  0x33   : > { %141 = vst.msk [vmem:[#allocation2 + $0x10] sm:$0xf] %vm140_vm1, %v559_v0  ;;  %144 = vst.msk [vmem:[#allocation2 + $0x28] sm:$0xf] %vm140_vm1, %v559_v0 }
  0x34   : > { %147 = vst.msk [vmem:[#allocation2 + $0x40] sm:$0xf] %vm140_vm1, %v559_v0  ;;  %s740_s10 = smov (!%p132_p8, %s592_s10), 1 }
  0x35   : > { %162 = vrot.lane.b32.xlu0 %v149_v3, %s560_s9  ;;  %166 = vrot.lane.b32.xlu1 %v151_v4, %s560_s9  ;;  %s446_s21 = smul.u32 72, %s740_s10 }
  0x37   : > { %s693_s24 = scalar_lea.vmem %s729_s1, %s446_s21 }
  0x39   : > { %168 = vrot.lane.b32.xlu0 %v152_v5, %s560_s9  ;;  %170 = vrot.lane.b32.xlu1 %v153_v6, %s560_s9 }
  0x3a   : > { %v196_v23 = vld [vmem:[#allocation2 + $0x12] sm:$0x3]  ;;  %v199_v27 = vld [vmem:[#allocation2 + $0x2a] sm:$0x3] }
  0x3b   : > { %v202_v57 = vld [vmem:[#allocation2 + $0x42] sm:$0x3] }
  0xa3   : > { %v161_v7 = vpop.permute.xlu0 %160  ;;  %v165_v8 = vpop.permute.xlu1 %164 }
  0xa4   : > { %179 = vst.msk [vmem:[#allocation2 + $0x2] sm:$0xff] %vm178_vm2, %v161_v7  ;;  %181 = vst.msk [vmem:[#allocation2 + $0x1a] sm:$0xff] %vm178_vm2, %v165_v8 }
  0xa7   : > { %v163_v9 = vpop.permute.xlu0 %162  ;;  %v167_v10 = vpop.permute.xlu1 %166 }
  0xa8   : > { %180 = vst.msk [vmem:[#allocation2 + $0xa] sm:$0xff] %vm178_vm2, %v163_v9  ;;  %182 = vst.msk [vmem:[#allocation2 + $0x22] sm:$0xff] %vm178_vm2, %v167_v10 }
  0xab   : > { %v169_v11 = vpop.permute.xlu0 %168  ;;  %v171_v12 = vpop.permute.xlu1 %170  ;;  %v185_v13 = vld [vmem:[#allocation2] sm:$0xff]  ;;  %v188_v17 = vld [vmem:[#allocation2 + $0x18] sm:$0xff] }
  0xac   : > { %v194_v14 = vld [vmem:[#allocation2 + $0x2] sm:$0xff]  ;;  %183 = vst.msk [vmem:[#allocation2 + $0x32] sm:$0xff] %vm178_vm2, %v169_v11  ;;  %184 = vst.msk [vmem:[#allocation2 + $0x3a] sm:$0xff] %vm178_vm2, %v171_v12  ;;  %v197_v18 = vld [vmem:[#allocation2 + $0x1a] sm:$0xff] }
  0xad   : > { %v221_v15 = vld [vmem:[#allocation2 + $0x1] sm:$0xff]  ;;  %v203_v16 = vadd.f32 %v194_v14, %v185_v13  ;;  %v206_v19 = vadd.f32 %v197_v18, %v188_v17  ;;  %v224_v20 = vld [vmem:[#allocation2 + $0x19] sm:$0xff] }
  0xae   : > { %v230_v22 = vmul.f32 0.2302173, %v221_v15  ;;  %v233_v32 = vmul.f32 0.2302173, %v224_v20 }
  0xaf   : > { %v212_v21 = vmul.f32 0.19487473, %v203_v16  ;;  %v186_v24 = vld [vmem:[#allocation2 + $0x8] sm:$0xff]  ;;  %v187_v30 = vld [vmem:[#allocation2 + $0x10] sm:$0x3]  ;;  %v189_v35 = vld [vmem:[#allocation2 + $0x20] sm:$0xff] }
  0xb0   : > { %v195_v25 = vld [vmem:[#allocation2 + $0xa] sm:$0xff]  ;;  %v205_v33 = vadd.f32 %v196_v23, %v187_v30  ;;  %v215_v34 = vmul.f32 0.19487473, %v206_v19  ;;  %v198_v36 = vld [vmem:[#allocation2 + $0x22] sm:$0xff] }
  0xb1   : > { %v222_v26 = vld [vmem:[#allocation2 + $0x9] sm:$0xff]  ;;  %v656_v28 = vadd.f32 %v230_v22, %v212_v21  ;;  %v204_v29 = vadd.f32 %v195_v25, %v186_v24  ;;  %v223_v31 = vld [vmem:[#allocation2 + $0x11] sm:$0x3]  ;;  %v225_v37 = vld [vmem:[#allocation2 + $0x21] sm:$0xff]  ;;  %v207_v40 = vadd.f32 %v198_v36, %v189_v35 }
  0xb2   : > { %v231_v39 = vmul.f32 0.2302173, %v222_v26  ;;  %v190_v41 = vld [vmem:[#allocation2 + $0x28] sm:$0x3]  ;;  %v214_v42 = vmul.f32 0.19487473, %v205_v33  ;;  %v242_v60 = vadd.f32 %v233_v32, %v215_v34 }
  0xb3   : > { %257 = vrot.lane.b32.xlu0 %v656_v28, %s561_s15  ;;  %v213_v38 = vmul.f32 0.19487473, %v204_v29  ;;  %v232_v43 = vmul.f32 0.2302173, %v223_v31  ;;  %v191_v44 = vld [vmem:[#allocation2 + $0x30] sm:$0xff]  ;;  %v208_v48 = vadd.f32 %v199_v27, %v190_v41  ;;  %v192_v54 = vld [vmem:[#allocation2 + $0x38] sm:$0xff] }
  0xb4   : > { %v200_v45 = vld [vmem:[#allocation2 + $0x32] sm:$0xff]  ;;  %v234_v47 = vmul.f32 0.2302173, %v225_v37  ;;  %v216_v52 = vmul.f32 0.19487473, %v207_v40  ;;  %v201_v55 = vld [vmem:[#allocation2 + $0x3a] sm:$0xff] }
  0xb5   : > { %v660_v46 = vadd.f32 %v231_v39, %v213_v38  ;;  %v209_v49 = vadd.f32 %v200_v45, %v191_v44  ;;  %v227_v50 = vld [vmem:[#allocation2 + $0x31] sm:$0xff]  ;;  %v662_v51 = vadd.f32 %v232_v43, %v214_v42  ;;  %v226_v53 = vld [vmem:[#allocation2 + $0x29] sm:$0x3]  ;;  %v193_v56 = vld [vmem:[#allocation2 + $0x40] sm:$0x3]  ;;  %v210_v63 = vadd.f32 %v201_v55, %v192_v54 }
  0xb6   : > { %v236_v59 = vmul.f32 0.2302173, %v227_v50  ;;  %v217_v61 = vmul.f32 0.19487473, %v208_v48  ;;  %v235_v62 = vmul.f32 0.2302173, %v226_v53  ;;  %v243_v0 = vadd.f32 %v234_v47, %v216_v52 }
  0xb7   : > { %259 = vrot.lane.b32.xlu1 %v660_v46, %s561_s15  ;;  %261 = vrot.lane.b32.xlu0 %v662_v51, %s561_s15  ;;  %v218_v58 = vmul.f32 0.19487473, %v209_v49  ;;  %v228_v1 = vld [vmem:[#allocation2 + $0x39] sm:$0xff]  ;;  %v211_v2 = vadd.f32 %v202_v57, %v193_v56  ;;  %v229_v3 = vld [vmem:[#allocation2 + $0x41] sm:$0x3] }
  0xb8   : > { %v244_v5 = vadd.f32 %v235_v62, %v217_v61  ;;  %v219_v6 = vmul.f32 0.19487473, %v210_v63  ;;  %v237_v7 = vmul.f32 0.2302173, %v228_v1  ;;  %v238_v9 = vmul.f32 0.2302173, %v229_v3 }
  0xb9   : > { %v670_v4 = vadd.f32 %v236_v59, %v218_v58  ;;  %v220_v8 = vmul.f32 0.19487473, %v211_v2  ;;  %v302_v12 = vmul.f32 0.2302173, %v656_v28  ;;  %v303_v13 = vmul.f32 0.2302173, %v660_v46 }
  0xba   : > { %v246_v10 = vadd.f32 %v237_v7, %v219_v6  ;;  %v304_v14 = vmul.f32 0.2302173, %v662_v51  ;;  %v305_v15 = vmul.f32 0.2302173, %v242_v60  ;;  %v306_v16 = vmul.f32 0.2302173, %v243_v0 }
  0xbb   : > { %263 = vrot.lane.b32.xlu1 %v242_v60, %s561_s15  ;;  %265 = vrot.lane.b32.xlu0 %v243_v0, %s561_s15  ;;  %v675_v11 = vadd.f32 %v238_v9, %v220_v8  ;;  %v307_v17 = vmul.f32 0.2302173, %v244_v5  ;;  %v308_v18 = vmul.f32 0.2302173, %v670_v4 }
  0xbc   : > { %v309_v19 = vmul.f32 0.2302173, %v246_v10 }
  0xbd   : > { %v310_v20 = vmul.f32 0.2302173, %v675_v11 }
  0xbf   : > { %267 = vrot.lane.b32.xlu1 %v244_v5, %s561_s15  ;;  %269 = vrot.lane.b32.xlu0 %v670_v4, %s561_s15 }
  0xc3   : > { %271 = vrot.lane.b32.xlu1 %v246_v10, %s561_s15  ;;  %273 = vrot.lane.b32.xlu0 %v675_v11, %s561_s15 }
  0xc7   : > { %320 = vrot.lane.b32.xlu1 %v302_v12, %s562_s19  ;;  %322 = vrot.lane.b32.xlu0 %v303_v13, %s562_s19 }
  0xcb   : > { %324 = vrot.lane.b32.xlu1 %v304_v14, %s562_s19  ;;  %326 = vrot.lane.b32.xlu0 %v305_v15, %s562_s19 }
  0xcf   : > { %328 = vrot.lane.b32.xlu1 %v306_v16, %s562_s19  ;;  %330 = vrot.lane.b32.xlu0 %v307_v17, %s562_s19 }
  0xd3   : > { %332 = vrot.lane.b32.xlu1 %v308_v18, %s562_s19  ;;  %334 = vrot.lane.b32.xlu0 %v309_v19, %s562_s19 }
  0xd7   : > { %336 = vrot.lane.b32.xlu1 %v310_v20, %s562_s19 }
 0x125   : > { %v258_v21 = vpop.permute.xlu0 %257 }
 0x126   : > { %v284_v29 = vadd.f32 %v258_v21, %v656_v28 }
 0x128   : > { %v293_v33 = vmul.f32 0.19487473, %v284_v29 }
 0x129   : > { %v260_v22 = vpop.permute.xlu1 %259  ;;  %v262_v23 = vpop.permute.xlu0 %261 }
 0x12a   : > { %v285_v30 = vadd.f32 %v260_v22, %v660_v46  ;;  %v286_v34 = vadd.f32 %v262_v23, %v662_v51 }
 0x12c   : > { %v294_v35 = vmul.f32 0.19487473, %v285_v30  ;;  %v295_v40 = vmul.f32 0.19487473, %v286_v34 }
 0x12d   : > { %v264_v24 = vpop.permute.xlu1 %263  ;;  %v266_v25 = vpop.permute.xlu0 %265 }
 0x12e   : > { %v287_v36 = vadd.f32 %v264_v24, %v242_v60  ;;  %v288_v41 = vadd.f32 %v266_v25, %v243_v0 }
 0x130   : > { %v296_v42 = vmul.f32 0.19487473, %v287_v36  ;;  %v297_v48 = vmul.f32 0.19487473, %v288_v41 }
 0x131   : > { %v268_v26 = vpop.permute.xlu1 %267  ;;  %v270_v27 = vpop.permute.xlu0 %269 }
 0x132   : > { %v289_v43 = vadd.f32 %v268_v26, %v244_v5  ;;  %v290_v49 = vadd.f32 %v270_v27, %v670_v4 }
 0x134   : > { %v298_v50 = vmul.f32 0.19487473, %v289_v43  ;;  %v299_v56 = vmul.f32 0.19487473, %v290_v49 }
 0x135   : > { %v272_v31 = vpop.permute.xlu1 %271  ;;  %v274_v32 = vpop.permute.xlu0 %273 }
 0x136   : > { %v291_v51 = vadd.f32 %v272_v31, %v246_v10  ;;  %v292_v57 = vadd.f32 %v274_v32, %v675_v11 }
 0x138   : > { %v300_v58 = vmul.f32 0.19487473, %v291_v51  ;;  %v301_v63 = vmul.f32 0.19487473, %v292_v57 }
 0x139   : > { %v321_v37 = vpop.permute.xlu1 %320  ;;  %v323_v28 = vpop.permute.xlu0 %322 }
 0x13a   : > { %v347_v38 = vadd.f32 %v321_v37, %v293_v33  ;;  %v348_v39 = vadd.f32 %v323_v28, %v294_v35 }
 0x13c   : > { %357 = vst.msk [vmem:[%s693_s24] sm:$0xff] %vm356_vm3, %v347_v38  ;;  %358 = vst.msk [vmem:[%s693_s24 + $0x8] sm:$0xff] %vm356_vm3, %v348_v39 }
 0x13d   : > { %v325_v44 = vpop.permute.xlu1 %324  ;;  %v327_v45 = vpop.permute.xlu0 %326 }
 0x13e   : > { %v349_v46 = vadd.f32 %v325_v44, %v295_v40  ;;  %v350_v47 = vadd.f32 %v327_v45, %v296_v42 }
 0x140   : > { %360 = vst.msk [vmem:[%s693_s24 + $0x10] sm:$0x3] %vm359_vm4, %v349_v46 }
 0x141   : > { %361 = vst.msk [vmem:[%s693_s24 + $0x18] sm:$0xff] %vm356_vm3, %v350_v47  ;;  %v329_v52 = vpop.permute.xlu1 %328  ;;  %v331_v53 = vpop.permute.xlu0 %330 }
 0x142   : > { %v351_v54 = vadd.f32 %v329_v52, %v297_v48  ;;  %v352_v55 = vadd.f32 %v331_v53, %v298_v50 }
 0x144   : > { %362 = vst.msk [vmem:[%s693_s24 + $0x20] sm:$0xff] %vm356_vm3, %v351_v54 }
 0x145   : > { %363 = vst.msk [vmem:[%s693_s24 + $0x28] sm:$0x3] %vm359_vm4, %v352_v55  ;;  %v333_v59 = vpop.permute.xlu1 %332  ;;  %v335_v60 = vpop.permute.xlu0 %334 }
 0x146   : > { %v353_v61 = vadd.f32 %v333_v59, %v299_v56  ;;  %v354_v62 = vadd.f32 %v335_v60, %v300_v58 }
 0x148   : > { %364 = vst.msk [vmem:[%s693_s24 + $0x30] sm:$0xff] %vm356_vm3, %v353_v61  ;;  %365 = vst.msk [vmem:[%s693_s24 + $0x38] sm:$0xff] %vm356_vm3, %v354_v62 }
 0x149   : > { %v337_v0 = vpop.permute.xlu1 %336 }
 0x14a   : > { %v355_v1 = vadd.f32 %v337_v0, %v301_v63 }
 0x14c   : > { %366 = vst.msk [vmem:[%s693_s24 + $0x40] sm:$0x3] %vm359_vm4, %v355_v1 }
 0x14d PF: > { %p11_p9 = scmp.ge.s32.totalorder %s595_s11, 4   ;;  %s735_s6 = smov %s546_s7 }
 0x14e   : > { %s736_s7 = smov %s550_s8  ;;  %s737_s8 = smov %s605_s14 }
 0x14f   : > { %s738_s9 = smov %s595_s11  ;;  %13 = sbr.rel (!%p11_p9) target bundleno = 3 (0x3), region = 64 }
 0x154   :  { %388 = vsyncpa [#allocation4], 1 }
 0x155   :  { %390 = vsyncpa [#allocation4 + $0x1], 1 }

</bundles_post_ra>
